<compile_context>
chip_gen: v6e
topology: v6e:2x2x1
jax: 0.10.0
libtpu: 0.0.40
codegen_flags: <defaults>
</compile_context>

<pallas_src>
import functools

import jax
import jax.numpy as jnp
from jax import lax
from jax.experimental import pallas as pl
from jax.experimental.pallas import tpu as pltpu

_LN_EPS = 1e-5  # nn.LayerNorm default


def _layernorm(z, w, b, eps=_LN_EPS):
    mu = jnp.mean(z, axis=-1, keepdims=True)
    var = jnp.mean(jnp.square(z - mu), axis=-1, keepdims=True)
    return (z - mu) * lax.rsqrt(var + eps) * w + b


# -----------------------------------------------------------------------------
# Hardware-aware knobs
# -----------------------------------------------------------------------------
@functools.lru_cache(maxsize=None)
def _vmem_limit_bytes():
    """Generation-aware scoped-VMEM limit, leaving headroom for compiler scratch.

    v5e/v6e (128 MiB physical) -> 112 MiB; v7x (64 MiB physical) -> 48 MiB.
    Falls back to 48 MiB (safe on every generation) if the query is unavailable.
    """
    try:
        phys = int(pltpu.get_tpu_info().vmem_capacity_bytes)
        return int(min(phys - 16 * 1024 * 1024, 112 * 1024 * 1024))
    except Exception:
        return 48 * 1024 * 1024


@functools.lru_cache(maxsize=None)
def _single_buffer_supported():
    """Probe whether BlockSpec(pipeline_mode=pl.Buffered(1)) compiles & runs here."""
    try:
        mode = pl.Buffered(1)
    except Exception:
        return False

    def _probe(w_ref, x_ref, o_ref):
        o_ref[...] = x_ref[...] + w_ref[...]

    try:
        x = jnp.zeros((16, 128), jnp.float32)
        w = jnp.ones((8, 128), jnp.float32)
        out = pl.pallas_call(
            _probe,
            out_shape=jax.ShapeDtypeStruct((16, 128), jnp.float32),
            grid=(2,),
            in_specs=[
                pl.BlockSpec((8, 128), lambda i: (0, 0), pipeline_mode=mode),
                pl.BlockSpec((8, 128), lambda i: (i, 0)),
            ],
            out_specs=pl.BlockSpec((8, 128), lambda i: (i, 0)),
        )(w, x)
        jax.block_until_ready(out)
        return True
    except Exception:
        return False


def _resident_spec(block_shape, index_map, single_buffer):
    """BlockSpec for operands that are (nearly) resident across the token-tile axis.

    Single-buffering halves their VMEM footprint (weights / full-N K,V), which
    frees VMEM for larger token tiles — critical on v7x's 64 MiB VMEM.
    """
    if single_buffer:
        try:
            return pl.BlockSpec(block_shape, index_map,
                                pipeline_mode=pl.Buffered(1))
        except TypeError:
            pass
    return pl.BlockSpec(block_shape, index_map)


def _select_tq(B, N, C, H, num_heads, vmem_bytes, resident_buf_factor):
    """Largest token tile whose live intermediates fit next to resident K/V + weights."""
    hd = C // num_heads
    # Resident bf16 operands: K + V + (W_q, W_proj, W_fc1, W_fc2).
    fixed = (2 * num_heads * N * hd + 2 * C * C + 2 * C * H) * 2 * resident_buf_factor
    budget = int(0.75 * vmem_bytes) - fixed
    candidates = [t for t in (256, 128, 64, 32, 16) if N % t == 0]
    if not candidates:
        return N                       # small / odd N: one full-sequence tile
    tq = candidates[-1]
    for t in candidates:
        per_tile = (2 * num_heads * t * N * 4     # softmax scores + probs (f32)
                    + 2 * t * H * 4               # MLP hidden activation
                    + 8 * t * C * 4)              # LN/q/ctx/residual/io tiles
        if per_tile <= budget:
            tq = t
            break
    # v7x has 2 TensorCores: make sure the parallel grid has >= 2 units of work.
    while B * (N // tq) < 2 and tq % 32 == 0 and N % (tq // 2) == 0:
        tq //= 2
    return tq


# -----------------------------------------------------------------------------
# Pass 1: LN1 + K/V projection, emitted head-major (B, h, N, hd) bf16.
# -----------------------------------------------------------------------------
def _kv_kernel(x_ref, n1w_ref, n1b_ref, wk_ref, wv_ref, k_ref, v_ref, *, num_heads):
    x = x_ref[0].astype(jnp.float32)                          # (TQ, C)
    tq, C = x.shape
    hd = C // num_heads
    xn = _layernorm(x, n1w_ref[0].astype(jnp.float32),
                    n1b_ref[0].astype(jnp.float32)).astype(jnp.bfloat16)
    k = jnp.dot(xn, wk_ref[...], preferred_element_type=jnp.float32)   # (TQ, C)
    v = jnp.dot(xn, wv_ref[...], preferred_element_type=jnp.float32)
    # Head-major relayout done ONCE per token here instead of on full-N K/V in
    # every pass-2 token tile.  (Last output dim is hd < 128 -> masked stores;
    # acceptable, the alternative layouts break (8,128) tiling for small tq.)
    k_ref[0] = k.reshape(tq, num_heads, hd).swapaxes(0, 1).astype(k_ref.dtype)
    v_ref[0] = v.reshape(tq, num_heads, hd).swapaxes(0, 1).astype(v_ref.dtype)


# -----------------------------------------------------------------------------
# Pass 2: q projection + attention (resident full-N head-major K/V) + proj +
# residual + LN2 + MLP + residual for one (batch, token-tile) block.
# -----------------------------------------------------------------------------
def _attn_mlp_kernel(x_ref, n1w_ref, n1b_ref, wq_ref, k_ref, v_ref,
                     wproj_ref, bproj_ref, n2w_ref, n2b_ref,
                     wfc1_ref, bfc1_ref, wfc2_ref, bfc2_ref,
                     o_ref, *, num_heads):
    x = x_ref[0].astype(jnp.float32)                          # (TQ, C) residual
    tq, C = x.shape
    hd = C // num_heads

    # q recomputed from the x tile (no HBM round trip); the 1/sqrt(head_dim)
    # attention scale is folded into W_q, so no per-score multiply.
    xn1 = _layernorm(x, n1w_ref[0].astype(jnp.float32),
                     n1b_ref[0].astype(jnp.float32)).astype(jnp.bfloat16)
    q = jnp.dot(xn1, wq_ref[...], preferred_element_type=jnp.float32)
    q = q.reshape(tq, num_heads, hd).swapaxes(0, 1).astype(jnp.bfloat16)  # (h,TQ,hd)

    k = k_ref[0]                                              # (h, N, hd) bf16
    v = v_ref[0]                                              # (h, N, hd) bf16

    s = jnp.einsum("hqd,hkd->hqk", q, k,
                   preferred_element_type=jnp.float32)        # (h, TQ, N) f32
    s = s - jnp.max(s, axis=-1, keepdims=True)
    p = jnp.exp(s)
    # EUP approximate reciprocal instead of a VALU divide over (h, TQ, N).
    p = p * pl.reciprocal(jnp.sum(p, axis=-1, keepdims=True), approx=True)
    ctx = jnp.einsum("hqk,hkd->hqd", p.astype(jnp.bfloat16), v,
                     preferred_element_type=jnp.float32)      # (h, TQ, hd) f32
    ctx = ctx.swapaxes(0, 1).reshape(tq, C)                   # (TQ, C) f32

    attn = (jnp.dot(ctx.astype(jnp.bfloat16), wproj_ref[...],
                    preferred_element_type=jnp.float32)
            + bproj_ref[0].astype(jnp.float32))
    x = x + attn                                              # residual 1

    xn2 = _layernorm(x, n2w_ref[0].astype(jnp.float32),
                     n2b_ref[0].astype(jnp.float32)).astype(jnp.bfloat16)
    h = (jnp.dot(xn2, wfc1_ref[...], preferred_element_type=jnp.float32)
         + bfc1_ref[0].astype(jnp.float32))
    h = jax.nn.gelu(h, approximate=False)    # exact erf GELU = nn.GELU() default
    mlp = (jnp.dot(h.astype(jnp.bfloat16), wfc2_ref[...],
                   preferred_element_type=jnp.float32)
           + bfc2_ref[0].astype(jnp.float32))
    o_ref[0] = (x + mlp).astype(o_ref.dtype)                  # residual 2


# -----------------------------------------------------------------------------
# One ViT block = two pallas_calls over a (batch, token-tile) parallel grid.
# -----------------------------------------------------------------------------
def vit_block(x, p, *, num_heads, tq=None, out_dtype=None):
    B, N, C = x.shape
    H = p["w_fc1"].shape[1]
    hd = C // num_heads
    assert C % 128 == 0, "embed_dim must be a multiple of 128 (TPU lane width)"
    assert C % num_heads == 0

    vmem_limit = _vmem_limit_bytes()
    single_buffer = _single_buffer_supported()

    if tq is None:
        tq = _select_tq(B, N, C, H, num_heads, vmem_limit,
                        1 if single_buffer else 2)
    # bf16 packs 16 rows per sublane group; tq % 16 avoids masked partial
    # stores on the bf16 head-major K/V outputs.
    assert N % tq == 0 and (tq % 16 == 0 or tq == N)
    nt = N // tq

    cparams = pltpu.CompilerParams(
        dimension_semantics=("parallel", "parallel"),
        vmem_limit_bytes=vmem_limit,
    )

    def const(shape):
        return _resident_spec(shape, lambda b, t: (0,) * len(shape), single_buffer)

    # ---- pass 1: LN1 + K/V projection, head-major (B, h, N, hd) bf16 --------
    k_hm, v_hm = pl.pallas_call(
        functools.partial(_kv_kernel, num_heads=num_heads),
        out_shape=(jax.ShapeDtypeStruct((B, num_heads, N, hd), jnp.bfloat16),
                   jax.ShapeDtypeStruct((B, num_heads, N, hd), jnp.bfloat16)),
        grid=(B, nt),
        in_specs=[
            pl.BlockSpec((1, tq, C), lambda b, t: (b, t, 0)),      # x tile
            const((1, C)), const((1, C)),                          # norm1 w, b
            const((C, C)), const((C, C)),                          # W_k, W_v
        ],
        out_specs=(
            pl.BlockSpec((1, num_heads, tq, hd), lambda b, t: (b, 0, t, 0)),
            pl.BlockSpec((1, num_heads, tq, hd), lambda b, t: (b, 0, t, 0)),
        ),
        compiler_params=cparams,
    )(x, p["n1_w"], p["n1_b"], p["w_k"], p["w_v"])

    # ---- pass 2: attention + proj + MLP -------------------------------------
    kv_spec = _resident_spec((1, num_heads, N, hd),
                             lambda b, t: (b, 0, 0, 0), single_buffer)
    return pl.pallas_call(
        functools.partial(_attn_mlp_kernel, num_heads=num_heads),
        out_shape=jax.ShapeDtypeStruct((B, N, C), out_dtype or x.dtype),
        grid=(B, nt),
        in_specs=[
            pl.BlockSpec((1, tq, C), lambda b, t: (b, t, 0)),      # x (residual)
            const((1, C)), const((1, C)),                          # norm1 w, b
            const((C, C)),                                         # W_q (scale folded)
            kv_spec, kv_spec,                                      # K, V (resident)
            const((C, C)), const((1, C)),                          # proj w, b
            const((1, C)), const((1, C)),                          # norm2 w, b
            const((C, H)), const((1, H)),                          # fc1 w, b
            const((H, C)), const((1, C)),                          # fc2 w, b
        ],
        out_specs=pl.BlockSpec((1, tq, C), lambda b, t: (b, t, 0)),
        compiler_params=cparams,
    )(x, p["n1_w"], p["n1_b"], p["w_q"], k_hm, v_hm,
      p["w_proj"], p["b_proj"], p["n2_w"], p["n2_b"],
      p["w_fc1"], p["b_fc1"], p["w_fc2"], p["b_fc2"])


def inverse_vit_encoder(x, params, *, num_heads, tq=None, activation_dtype=None):
    """Sequential stack of ViT blocks.

    activation_dtype=jnp.bfloat16 carries the residual stream between blocks in
    bf16 (halves x HBM traffic — worthwhile on v5e); math stays f32 in-kernel.
    """
    out_dtype = activation_dtype or x.dtype
    for p in params:
        x = vit_block(x, p, num_heads=num_heads, tq=tq, out_dtype=out_dtype)
    return x


# -----------------------------------------------------------------------------
# Deterministic parameter construction (shapes implied by the module __init__).
# Matmul weights stored bf16; LayerNorm params and biases stay f32.
# qkv_bias=False is the module default, so no q/k/v bias is applied.
# -----------------------------------------------------------------------------
def make_params(key, depth, embed_dim, num_heads, mlp_ratio):
    C = embed_dim
    H = int(C * mlp_ratio)
    hd = C // num_heads
    scale = float(hd) ** -0.5
    params = []
    for d in range(depth):
        k = jax.random.fold_in(key, d)
        kq, kk, kv, kproj, kfc1, kfc2 = jax.random.split(k, 6)

        def init(k_, shape):
            return 0.02 * jax.random.normal(k_, shape, jnp.float32)

        params.append(dict(
            n1_w=jnp.ones((1, C), jnp.float32),
            n1_b=jnp.zeros((1, C), jnp.float32),
            # 1/sqrt(head_dim) attention scale folded into W_q (removes an
            # (h, TQ, N) f32 VALU multiply per grid step in the kernel).
            w_q=(init(kq, (C, C)) * scale).astype(jnp.bfloat16),
            w_k=init(kk, (C, C)).astype(jnp.bfloat16),
            w_v=init(kv, (C, C)).astype(jnp.bfloat16),
            w_proj=init(kproj, (C, C)).astype(jnp.bfloat16),
            b_proj=jnp.zeros((1, C), jnp.float32),
            n2_w=jnp.ones((1, C), jnp.float32),
            n2_b=jnp.zeros((1, C), jnp.float32),
            w_fc1=init(kfc1, (C, H)).astype(jnp.bfloat16),
            b_fc1=jnp.zeros((1, H), jnp.float32),
            w_fc2=init(kfc2, (H, C)).astype(jnp.bfloat16),
            b_fc2=jnp.zeros((1, C), jnp.float32),
        ))
    return params


# -----------------------------------------------------------------------------
# Pure-JAX reference (same params, f32 math) for a correctness check.
# -----------------------------------------------------------------------------
def _reference_block(x, p, num_heads):
    xf = x.astype(jnp.float32)
    B, N, C = xf.shape
    hd = C // num_heads

    def ln(z, w, b):
        mu = jnp.mean(z, -1, keepdims=True)
        var = jnp.mean(jnp.square(z - mu), -1, keepdims=True)
        return (z - mu) / jnp.sqrt(var + _LN_EPS) * w + b

    xn = ln(xf, p["n1_w"][0], p["n1_b"][0])
    q = xn @ p["w_q"].astype(jnp.float32)      # scale already folded into W_q
    k = xn @ p["w_k"].astype(jnp.float32)
    v = xn @ p["w_v"].astype(jnp.float32)

    def split(t):
        return t.reshape(B, N, num_heads, hd).transpose(0, 2, 1, 3)

    q, k, v = split(q), split(k), split(v)
    s = jnp.einsum("bhqd,bhkd->bhqk", q, k)
    a = jax.nn.softmax(s, axis=-1)
    ctx = jnp.einsum("bhqk,bhkd->bhqd", a, v).transpose(0, 2, 1, 3).reshape(B, N, C)
    xf = xf + ctx @ p["w_proj"].astype(jnp.float32) + p["b_proj"][0]

    xn2 = ln(xf, p["n2_w"][0], p["n2_b"][0])
    h = jax.nn.gelu(xn2 @ p["w_fc1"].astype(jnp.float32) + p["b_fc1"][0],
                    approximate=False)
    return xf + h @ p["w_fc2"].astype(jnp.float32) + p["b_fc2"][0]


def _reference_forward(x, params, num_heads):
    for p in params:
        x = _reference_block(x, p, num_heads)
    return x


if __name__ == "__main__":
    # Small shapes consistent with the module: x is (B, N, C) token embeddings.
    # C must be a multiple of 128 (lane width); tq=16 exercises the token-tile grid.
    B, N = 2, 32
    embed_dim, num_heads, mlp_ratio, depth = 128, 4, 4.0, 2

    key = jax.random.PRNGKey(0)
    kx, kp = jax.random.split(key)
    x = jax.random.normal(kx, (B, N, embed_dim), jnp.float32)
    params = make_params(kp, depth, embed_dim, num_heads, mlp_ratio)

    out = inverse_vit_encoder(x, params, num_heads=num_heads, tq=16)
    jax.block_until_ready(out)
    assert out.shape == (B, N, embed_dim)
    assert jnp.all(jnp.isfinite(out))

    # Tolerance covers bf16 matmul operands + approx-reciprocal softmax.
    ref = _reference_forward(x, params, num_heads)
    err = float(jnp.max(jnp.abs(out - ref)))
    assert err < 5e-2, f"kernel/reference mismatch: max|diff|={err}"
    print("KERNEL_OK")
</pallas_src>

<mosaic_0001>
module attributes {stable_mosaic.version = 11 : i64} {
  func.func @_probe(%arg0: i32, %arg1: memref<8x128xf32, #tpu.memory_space<vmem>>, %arg2: memref<8x128xf32, #tpu.memory_space<vmem>>, %arg3: memref<8x128xf32, #tpu.memory_space<vmem>>) attributes {dimension_semantics = [#tpu.dimension_semantics<arbitrary>], iteration_bounds = array<i64: 2>, scalar_prefetch = 0 : i64, scratch_operands = 0 : i64, tpu.core_type = #tpu.core_type<tc>, window_params = [{pipeline_mode = #tpu.pipeline_mode<synchronous>, transform_indices = @transform_0, window_bounds = array<i64: 8, 128>}, {transform_indices = @transform_1, window_bounds = array<i64: 8, 128>}, {transform_indices = @transform_2, window_bounds = array<i64: 8, 128>}]} {
    %c0 = arith.constant 0 : index
    %c0_0 = arith.constant 0 : index
    %0 = vector.load %arg2[%c0, %c0_0] : memref<8x128xf32, #tpu.memory_space<vmem>>, vector<8x128xf32>
    %c0_1 = arith.constant 0 : index
    %c0_2 = arith.constant 0 : index
    %1 = vector.load %arg1[%c0_1, %c0_2] : memref<8x128xf32, #tpu.memory_space<vmem>>, vector<8x128xf32>
    %2 = arith.addf %0, %1 : vector<8x128xf32>
    %c0_3 = arith.constant 0 : index
    %c0_4 = arith.constant 0 : index
    %3 = vector.load %arg3[%c0_3, %c0_4] : memref<8x128xf32, #tpu.memory_space<vmem>>, vector<8x128xf32>
    tpu.vector_store %arg3[%c0_3, %c0_4], %2 {strides = array<i32>} : memref<8x128xf32, #tpu.memory_space<vmem>>, vector<8x128xf32>,
    return
  }
  func.func @transform_0(%arg0: i32) -> (i32, i32) {
    %c0_i32 = arith.constant 0 : i32
    %c0_i32_0 = arith.constant 0 : i32
    %c0_i32_1 = arith.constant 0 : i32
    return %c0_i32, %c0_i32_0 : i32, i32
  }
  func.func @transform_1(%arg0: i32) -> (i32, i32) {
    %c0_i32 = arith.constant 0 : i32
    %c0_i32_0 = arith.constant 0 : i32
    return %arg0, %c0_i32 : i32, i32
  }
  func.func @transform_2(%arg0: i32) -> (i32, i32) {
    %c0_i32 = arith.constant 0 : i32
    %c0_i32_0 = arith.constant 0 : i32
    return %arg0, %c0_i32 : i32, i32
  }
}

module attributes {stable_mosaic.version = 11 : i64} {
  func.func @_kv_kernel(%arg0: i32, %arg1: i32, %arg2: memref<1x16x128xf32, #tpu.memory_space<vmem>>, %arg3: memref<1x128xf32, #tpu.memory_space<vmem>>, %arg4: memref<1x128xf32, #tpu.memory_space<vmem>>, %arg5: memref<128x128xbf16, #tpu.memory_space<vmem>>, %arg6: memref<128x128xbf16, #tpu.memory_space<vmem>>, %arg7: memref<1x4x16x32xbf16, #tpu.memory_space<vmem>>, %arg8: memref<1x4x16x32xbf16, #tpu.memory_space<vmem>>) attributes {dimension_semantics = [#tpu.dimension_semantics<parallel>, #tpu.dimension_semantics<parallel>], iteration_bounds = array<i64: 2, 2>, scalar_prefetch = 0 : i64, scratch_operands = 0 : i64, tpu.core_type = #tpu.core_type<tc>, window_params = [{transform_indices = @transform_0, window_bounds = array<i64: 1, 16, 128>}, {pipeline_mode = #tpu.pipeline_mode<synchronous>, transform_indices = @transform_1, window_bounds = array<i64: 1, 128>}, {pipeline_mode = #tpu.pipeline_mode<synchronous>, transform_indices = @transform_2, window_bounds = array<i64: 1, 128>}, {pipeline_mode = #tpu.pipeline_mode<synchronous>, transform_indices = @transform_3, window_bounds = array<i64: 128, 128>}, {pipeline_mode = #tpu.pipeline_mode<synchronous>, transform_indices = @transform_4, window_bounds = array<i64: 128, 128>}, {transform_indices = @transform_5, window_bounds = array<i64: 1, 4, 16, 32>}, {transform_indices = @transform_6, window_bounds = array<i64: 1, 4, 16, 32>}]} {
    %c0 = arith.constant 0 : index
    %c0_0 = arith.constant 0 : index
    %c0_1 = arith.constant 0 : index
    %0 = vector.load %arg2[%c0, %c0_0, %c0_1] : memref<1x16x128xf32, #tpu.memory_space<vmem>>, vector<1x16x128xf32>
    %1 = vector.shape_cast %0 : vector<1x16x128xf32> to vector<16x128xf32>
    %c0_2 = arith.constant 0 : index
    %c0_3 = arith.constant 0 : index
    %2 = vector.load %arg3[%c0_2, %c0_3] : memref<1x128xf32, #tpu.memory_space<vmem>>, vector<1x128xf32>
    %3 = vector.shape_cast %2 : vector<1x128xf32> to vector<128xf32>
    %c0_4 = arith.constant 0 : index
    %c0_5 = arith.constant 0 : index
    %4 = vector.load %arg4[%c0_4, %c0_5] : memref<1x128xf32, #tpu.memory_space<vmem>>, vector<1x128xf32>
    %5 = vector.shape_cast %4 : vector<1x128xf32> to vector<128xf32>
    %cst = arith.constant dense<0.000000e+00> : vector<16xf32>
    %6 = vector.multi_reduction <add>, %1, %cst [1] : vector<16x128xf32> to vector<16xf32>
    %7 = vector.shape_cast %6 : vector<16xf32> to vector<16x1xf32>
    %cst_6 = arith.constant 1.280000e+02 : f32
    %8 = vector.broadcast %cst_6 : f32 to vector<16x1xf32>
    %9 = arith.divf %7, %8 : vector<16x1xf32>
    %10 = vector.broadcast %9 : vector<16x1xf32> to vector<16x128xf32>
    %11 = arith.subf %1, %10 : vector<16x128xf32>
    %12 = arith.mulf %11, %11 : vector<16x128xf32>
    %cst_7 = arith.constant dense<0.000000e+00> : vector<16xf32>
    %13 = vector.multi_reduction <add>, %12, %cst_7 [1] : vector<16x128xf32> to vector<16xf32>
    %14 = vector.shape_cast %13 : vector<16xf32> to vector<16x1xf32>
    %cst_8 = arith.constant 1.280000e+02 : f32
    %15 = vector.broadcast %cst_8 : f32 to vector<16x1xf32>
    %16 = arith.divf %14, %15 : vector<16x1xf32>
    %17 = vector.broadcast %9 : vector<16x1xf32> to vector<16x128xf32>
    %18 = arith.subf %1, %17 : vector<16x128xf32>
    %cst_9 = arith.constant 9.99999974E-6 : f32
    %19 = vector.broadcast %cst_9 : f32 to vector<16x1xf32>
    %20 = arith.addf %16, %19 : vector<16x1xf32>
    %21 = math.rsqrt %20 : vector<16x1xf32>
    %22 = vector.broadcast %21 : vector<16x1xf32> to vector<16x128xf32>
    %23 = arith.mulf %18, %22 : vector<16x128xf32>
    %24 = vector.shape_cast %3 : vector<128xf32> to vector<1x128xf32>
    %25 = vector.broadcast %24 : vector<1x128xf32> to vector<16x128xf32>
    %26 = arith.mulf %23, %25 : vector<16x128xf32>
    %27 = vector.shape_cast %5 : vector<128xf32> to vector<1x128xf32>
    %28 = vector.broadcast %27 : vector<1x128xf32> to vector<16x128xf32>
    %29 = arith.addf %26, %28 : vector<16x128xf32>
    %30 = arith.truncf %29 : vector<16x128xf32> to vector<16x128xbf16>
    %c0_10 = arith.constant 0 : index
    %c0_11 = arith.constant 0 : index
    %31 = vector.load %arg5[%c0_10, %c0_11] : memref<128x128xbf16, #tpu.memory_space<vmem>>, vector<128x128xbf16>
    %cst_12 = arith.constant dense<0.000000e+00> : vector<16x128xf32>
    %32 = tpu.matmul %30, %31, %cst_12 {dimension_numbers = #tpu.dot_dimension_numbers<[1], [0], [0], [1], [0, 0, 1, 1], [], []>} : vector<16x128xbf16>, vector<128x128xbf16>, vector<16x128xf32> -> vector<16x128xf32>
    %c0_13 = arith.constant 0 : index
    %c0_14 = arith.constant 0 : index
    %33 = vector.load %arg6[%c0_13, %c0_14] : memref<128x128xbf16, #tpu.memory_space<vmem>>, vector<128x128xbf16>
    %cst_15 = arith.constant dense<0.000000e+00> : vector<16x128xf32>
    %34 = tpu.matmul %30, %33, %cst_15 {dimension_numbers = #tpu.dot_dimension_numbers<[1], [0], [0], [1], [0, 0, 1, 1], [], []>} : vector<16x128xbf16>, vector<128x128xbf16>, vector<16x128xf32> -> vector<16x128xf32>
    %35 = vector.shape_cast %32 : vector<16x128xf32> to vector<16x4x32xf32>
    %36 = tpu.transpose %35, [1, 0, 2] : vector<16x4x32xf32> -> vector<4x16x32xf32>
    %37 = arith.truncf %36 : vector<4x16x32xf32> to vector<4x16x32xbf16>
    %c0_16 = arith.constant 0 : index
    %c0_17 = arith.constant 0 : index
    %c0_18 = arith.constant 0 : index
    %c0_19 = arith.constant 0 : index
    %38 = vector.load %arg7[%c0_16, %c0_17, %c0_18, %c0_19] : memref<1x4x16x32xbf16, #tpu.memory_space<vmem>>, vector<1x4x16x32xbf16>
    %39 = vector.shape_cast %38 : vector<1x4x16x32xbf16> to vector<4x16x32xbf16>
    %40 = vector.shape_cast %37 : vector<4x16x32xbf16> to vector<1x4x16x32xbf16>
    tpu.vector_store %arg7[%c0_16, %c0_17, %c0_18, %c0_19], %40 {strides = array<i32>} : memref<1x4x16x32xbf16, #tpu.memory_space<vmem>>, vector<1x4x16x32xbf16>,
    %41 = vector.shape_cast %34 : vector<16x128xf32> to vector<16x4x32xf32>
    %42 = tpu.transpose %41, [1, 0, 2] : vector<16x4x32xf32> -> vector<4x16x32xf32>
    %43 = arith.truncf %42 : vector<4x16x32xf32> to vector<4x16x32xbf16>
    %c0_20 = arith.constant 0 : index
    %c0_21 = arith.constant 0 : index
    %c0_22 = arith.constant 0 : index
    %c0_23 = arith.constant 0 : index
    %44 = vector.load %arg8[%c0_20, %c0_21, %c0_22, %c0_23] : memref<1x4x16x32xbf16, #tpu.memory_space<vmem>>, vector<1x4x16x32xbf16>
    %45 = vector.shape_cast %44 : vector<1x4x16x32xbf16> to vector<4x16x32xbf16>
    %46 = vector.shape_cast %43 : vector<4x16x32xbf16> to vector<1x4x16x32xbf16>
    tpu.vector_store %arg8[%c0_20, %c0_21, %c0_22, %c0_23], %46 {strides = array<i32>} : memref<1x4x16x32xbf16, #tpu.memory_space<vmem>>, vector<1x4x16x32xbf16>,
    return
  }
  func.func @transform_0(%arg0: i32, %arg1: i32) -> (i32, i32, i32) {
    %c0_i32 = arith.constant 0 : i32
    %c0_i32_0 = arith.constant 0 : i32
    return %arg0, %arg1, %c0_i32 : i32, i32, i32
  }
  func.func @transform_1(%arg0: i32, %arg1: i32) -> (i32, i32) {
    %c0_i32 = arith.constant 0 : i32
    %c0_i32_0 = arith.constant 0 : i32
    %c0_i32_1 = arith.constant 0 : i32
    return %c0_i32, %c0_i32_0 : i32, i32
  }
  func.func @transform_2(%arg0: i32, %arg1: i32) -> (i32, i32) {
    %c0_i32 = arith.constant 0 : i32
    %c0_i32_0 = arith.constant 0 : i32
    %c0_i32_1 = arith.constant 0 : i32
    return %c0_i32, %c0_i32_0 : i32, i32
  }
  func.func @transform_3(%arg0: i32, %arg1: i32) -> (i32, i32) {
    %c0_i32 = arith.constant 0 : i32
    %c0_i32_0 = arith.constant 0 : i32
    %c0_i32_1 = arith.constant 0 : i32
    return %c0_i32, %c0_i32_0 : i32, i32
  }
  func.func @transform_4(%arg0: i32, %arg1: i32) -> (i32, i32) {
    %c0_i32 = arith.constant 0 : i32
    %c0_i32_0 = arith.constant 0 : i32
    %c0_i32_1 = arith.constant 0 : i32
    return %c0_i32, %c0_i32_0 : i32, i32
  }
  func.func @transform_5(%arg0: i32, %arg1: i32) -> (i32, i32, i32, i32) {
    %c0_i32 = arith.constant 0 : i32
    %c0_i32_0 = arith.constant 0 : i32
    %c0_i32_1 = arith.constant 0 : i32
    return %arg0, %c0_i32, %arg1, %c0_i32_0 : i32, i32, i32, i32
  }
  func.func @transform_6(%arg0: i32, %arg1: i32) -> (i32, i32, i32, i32) {
    %c0_i32 = arith.constant 0 : i32
    %c0_i32_0 = arith.constant 0 : i32
    %c0_i32_1 = arith.constant 0 : i32
    return %arg0, %c0_i32, %arg1, %c0_i32_0 : i32, i32, i32, i32
  }
}

</mosaic_0001>

<bundles_post_ra>
// kernel: tpu_custom_call.1
= control target key start
LH: loop header
LB: loop body
LE: loop exit
PB: predicated region body
PF: predicated region fallthrough
CT: control target
= control target key end

     0   :  { %7 = vsyncpa [#allocation3], 0  ;;  %s651_s0 = inlined_call_operand.hbm [shape: f32[8,128], index: 0, kind: input, shape index: {}]   ;;  %s652_s1 = inlined_call_operand.hbm [shape: f32[16,128], index: 1, kind: input, shape index: {}]   ;;  %s653_s2 = inlined_call_operand.hbm [shape: f32[16,128], index: 2, kind: output, shape index: {}]  }
   0x1   :  { %8 = vsyncpa [#allocation6], 0 }
   0x2   :  { %10 = vsyncpa [#allocation6 + $0x1], 0 }
   0x3   :  { %11 = vsyncpa [#allocation4], 0 }
   0x4   :  { %13 = vsyncpa [#allocation4 + $0x1], 0  ;;  %s485_s9 = smov 0   ;;  %s487_s10 = smov 0  }
   0x5   :  { %s489_s11 = smov 0   ;;  %s491_s12 = smov 0  }
   0x6 LB: > { %s506_s13 = sadd.s32 4294967295, %s465_s12   ;;  %s272_s14 = sadd.s32 4294967294, %s465_s12   ;;  %s465_s12 = sphi %s491_s12, %s676_s12   ;;  %s461_s11 = sphi %s489_s11, %s675_s11   ;;  %s457_s10 = sphi %s487_s10, %s674_s10   ;;  %s453_s9 = sphi %s485_s9, %s673_s9  }
   0x7   : > { %p60_p0 = scmp.ne.s32.totalorder %s457_s10, %s453_s9  ;;  %p654_p1 = scmp.eq.s32.totalorder %s506_s13, 0 }
   0x8   : > { %p90_p3 = scmp.eq.s32.totalorder %s272_s14, 1  ;;  %p273_p5 = scmp.ge.s32.totalorder %s465_s12, 1 }
   0x9   : > { %p515_p4 = por %p654_p1, %p60_p0  ;;  %p97_p7 = scmp.lt.s32.totalorder %s465_s12, 3 }
   0xa   : > { %p520_p6 = por %p90_p3, %p60_p0  ;;  %s467_s18 = smov [#allocation2]  }
   0xb   : > { %s658_s15 = scalar_select %p515_p4, 1, 0 }
   0xc   : > { %s659_s16 = scalar_select %p520_p6, 1, 0 }
   0xd   : > { %p525_p8 = pnand %p273_p5, %p97_p7  ;;  %s110_s19 = sshll.u32 %s467_s18, 4  ;;  %s111_s19 = int_to_ptr.vmem [resolvable:$true] %s110_s19 }
   0xe   : > { %s533_s20 = sadd.s32 1, %s465_s12   ;;  %s47_s24 = sadd.s32 1, %s461_s11 }
   0xf   : > { %s660_s17 = scalar_select %p525_p8, 1, 0 }
  0x10   : > { %p294_p10 = pneg %p525_p8  ;;  %s44_s22 = ssub.s32 %s465_s12, %s533_s20 }
  0x11   : > { %p543_p12 = scmp.eq.s32.totalorder %s44_s22, 0  ;;  %p54_p13 = scmp.ne.s32.totalorder %s461_s11, %s457_s10 }
  0x12   : > { %p537_p11 = pnand %p294_p10, %p654_p1  ;;  %s354_s25 = scalar_lea.vmem %s111_s19, 128 }
  0x13   : > { %p355_p3 = scmp.ne.s32.totalorder %s111_s19, %s354_s25  ;;  %p362_p9 = scmp.lt.s32.totalorder %s111_s19, %s111_s19 }
  0x14   : > { %p345_p0 = pneg %p537_p11  ;;  %p363_p2 = scmp.lt.s32.totalorder %s354_s25, %s354_s25 }
  0x16   : > { %p357_p5 = pnand %p355_p3, %p345_p0  ;;  %p364_p10 = por %p363_p2, %p362_p9 }
  0x18   : > { %p358_p7 = pneg %p357_p5 }
  0x1a   : > { %p365_p1 = pnand %p364_p10, %p358_p7 }
  0x1c   : > { %368 = shalt.err (!%p365_p1)
}
  0x1d   : > { %297 = dma.hbm_to_vmem [thread:$0]  (!%p537_p11), %s651_s0, 128, %s111_s19, [#allocation3]  }
  0x1e   : > { %s560_s28 = scalar_select %p543_p12, %s461_s11, %s47_s24  }
  0x1f   : > { %p55_p1 = scmp.eq.s32.totalorder %s465_s12, 0  ;;  %p663_p2 = scmp.eq.s32.totalorder %s506_s13, 1 }
  0x20   : > { %p307_p0 = scmp.lt.s32.totalorder %s465_s12, 2  ;;  %s121_s30 = sand.u32 1, %s461_s11  }
  0x21   : > { %p568_p9 = por %p663_p2, %p54_p13  ;;  %p56_p3 = por %p55_p1, %p54_p13 }
  0x22   : > { %s276_s3 = sshll.u32 %s121_s30, 3  ;;  %s277_s4 = sshll.u32 %s465_s12, 7 }
  0x23   : > { %s664_s29 = scalar_select %p568_p9, 1, 0 }
  0x24   : > { %s581_s7 = scalar_lea.hbm %s652_s1, %s277_s4  ;;  %s125_s8 = scalar_lea.vmem [#allocation5], %s276_s3 }
  0x25   : > { %s132_s14 = sshll.u32 %s125_s8, 4  ;;  %p583_p11 = pnand %p307_p0, %p56_p3  ;;  %s133_s14 = int_to_ptr.vmem [resolvable:$true] %s132_s14 }
  0x26   : > { %s122_s19 = scalar_lea.sflag [#allocation6], %s121_s30  ;;  %s369_s21 = scalar_lea.hbm %s581_s7, 128 }
  0x27   : > { %p370_p12 = scmp.ne.s32.totalorder %s581_s7, %s369_s21  ;;  %p371_p13 = pneg %p583_p11 }
  0x28   : > { %s374_s24 = scalar_lea.hbm %s652_s1, 256  ;;  %p375_p10 = scmp.lt.s32.totalorder %s581_s7, %s652_s1 }
  0x29   : > { %p372_p5 = pnand %p371_p13, %p370_p12  ;;  %p376_p1 = scmp.lt.s32.totalorder %s374_s24, %s369_s21 }
  0x2b   : > { %p373_p7 = pneg %p372_p5  ;;  %p377_p2 = por %p376_p1, %p375_p10 }
  0x2d   : > { %p378_p0 = pnand %p377_p2, %p373_p7 }
  0x2f   : > { %381 = shalt.err (!%p378_p0)
}
  0x30   : > { %s382_s27 = scalar_lea.vmem %s133_s14, 128  ;;  %s468_s30 = smov [#allocation5]  }
  0x31   : > { %p383_p3 = scmp.ne.s32.totalorder %s133_s14, %s382_s27  ;;  %s387_s3 = sshll.u32 %s468_s30, 4  ;;  %s388_s3 = int_to_ptr.vmem [resolvable:$false] %s387_s3 }
  0x32   : > { %s389_s4 = scalar_lea.vmem %s388_s3, 256  ;;  %p390_p12 = scmp.lt.s32.totalorder %s133_s14, %s388_s3 }
  0x33   : > { %p385_p6 = pnand %p383_p3, %p371_p13  ;;  %p391_p5 = scmp.lt.s32.totalorder %s389_s4, %s382_s27 }
  0x35   : > { %p386_p9 = pneg %p385_p6  ;;  %p392_p4 = por %p391_p5, %p390_p12 }
  0x37   : > { %p393_p8 = pnand %p392_p4, %p386_p9 }
  0x39   : > { %396 = shalt.err (!%p393_p8)
}
  0x3a   : > { %301 = dma.hbm_to_vmem [thread:$0]  (!%p583_p11), %s581_s7, 128, %s133_s14, %s122_s19  }
  0x3b   : > { %p666_p7 = scmp.ne.s32.totalorder %s660_s17, 0 }
  0x3c   : > { %p667_p10 = scmp.eq.s32.totalorder (!%p666_p7), %s506_s13, 0 }
  0x3d   : > { %141 = sbr.rel (%p666_p7) target bundleno = 96 (0x60), region = 28 }
  0x42   : > { %440 = dma.done.wait (%p667_p10), [#allocation3], 128   ;;  %p668_p6 = pmov %p667_p10 }
  0x43   : > { %s608_s5 = sand.u32 1, %s457_s10   ;;  %p669_p4 = scmp.ne.s32.totalorder %s658_s15, 0 }
  0x44   : > { %442 = vsyncadd (%p668_p6), [#allocation3], 4294967168  ;;  %s280_s6 = sshll.u32 %s608_s5, 3  ;;  %s148_s8 = scalar_lea.sflag [#allocation6], %s608_s5 }
  0x45   : > { %s151_s18 = scalar_lea.vmem [#allocation5], %s280_s6 }
  0x46   : > { %444 = dma.done.wait (%p669_p4), %s148_s8, 128  }
  0x47   : > { %446 = vsyncadd (%p669_p4), %s148_s8, 4294967168  ;;  %s171_s17 = scalar_lea.vmem [#allocation7], %s280_s6  ;;  %s283_s14 = sshll.u32 %s506_s13, 7  ;;  %v172_v0 = vld [vmem:[%s151_s18] sm:$0xff]  ;;  %v173_v1 = vld [vmem:[#allocation2] sm:$0xff] }
  0x48   : > { %s190_s7 = sshll.u32 %s171_s17, 4  ;;  %v174_v2 = vadd.f32 %v173_v1, %v172_v0  ;;  %s188_s22 = scalar_lea.hbm %s653_s2, %s283_s14  ;;  %s191_s7 = int_to_ptr.vmem [resolvable:$true] %s190_s7 }
  0x49   : > { %s177_s23 = scalar_lea.sflag [#allocation4], %s608_s5  ;;  %s397_s24 = scalar_lea.vmem %s191_s7, 128 }
  0x4a   : > { %175 = vst [vmem:[%s171_s17] sm:$0xff] %v174_v2  ;;  %p398_p8 = scmp.ne.s32.totalorder %s191_s7, %s397_s24  ;;  %p670_p9 = scmp.ne.s32.totalorder %s664_s29, 0 }
  0x4b   : > { %s469_s15 = smov [#allocation7]  }
  0x4c   : > { %p399_p11 = pnand %p398_p8, %p670_p9  ;;  %s401_s25 = sshll.u32 %s469_s15, 4  ;;  %s402_s25 = int_to_ptr.vmem [resolvable:$false] %s401_s25 }
  0x4d   : > { %s403_s26 = scalar_lea.vmem %s402_s25, 256  ;;  %p404_p1 = scmp.lt.s32.totalorder %s191_s7, %s402_s25 }
  0x4e   : > { %p400_p13 = pneg %p399_p11  ;;  %p405_p2 = scmp.lt.s32.totalorder %s403_s26, %s397_s24 }
  0x50   : > { %p406_p0 = por %p405_p2, %p404_p1 }
  0x52   : > { %p407_p3 = pnand %p406_p0, %p400_p13 }
  0x54   : > { %410 = shalt.err (!%p407_p3)
}
  0x55   : > { %s411_s13 = scalar_lea.hbm %s188_s22, 128  ;;  %s415_s3 = scalar_lea.hbm %s653_s2, 256 }
  0x56   : > { %p412_p12 = scmp.ne.s32.totalorder %s188_s22, %s411_s13  ;;  %p416_p10 = scmp.lt.s32.totalorder %s188_s22, %s653_s2 }
  0x57   : > { %p417_p6 = scmp.lt.s32.totalorder %s415_s3, %s411_s13 }
  0x58   : > { %p413_p5 = pnand %p412_p12, %p670_p9 }
  0x59   : > { %p418_p4 = por %p417_p6, %p416_p10 }
  0x5a   : > { %p414_p7 = pneg %p413_p5 }
  0x5c   : > { %p419_p8 = pnand %p418_p4, %p414_p7 }
  0x5e   : > { %422 = shalt.err (!%p419_p8)
}
  0x5f   : > { %292 = dma.vmem_to_hbm [thread:$0]  (%p670_p9), %s191_s7, 128, %s188_s22, %s177_s23  }
  0x60 PF: > { %s202_s6 = sand.u32 1, %s453_s9   ;;  %p671_p11 = scmp.ne.s32.totalorder %s659_s16, 0 }
  0x61   : > { %p672_p13 = scmp.ge.s32.totalorder %s465_s12, 2  ;;  %s203_s8 = scalar_lea.sflag [#allocation4], %s202_s6 }
  0x63   : > { %p303_p1 = pnand %p672_p13, %p671_p11 }
  0x65   : > { %p304_p2 = pneg %p303_p1 }
  0x67   : > { %448 = dma.done.wait (%p304_p2), %s203_s8, 128  }
  0x68   : > { %450 = vsyncadd (%p304_p2), %s203_s8, 4294967168  ;;  %p16_p0 = scmp.ge.s32.totalorder %s533_s20, 4   ;;  %s673_s9 = smov %s457_s10 }
  0x69   : > { %s674_s10 = smov %s461_s11  ;;  %s675_s11 = smov %s560_s28 }
  0x6a   : > { %s676_s12 = smov %s533_s20  ;;  %18 = sbr.rel (!%p16_p0) target bundleno = 6 (0x6), region = 78 }
  0x6f   :  { %208 = vsyncpa [#allocation3], 1 }
  0x70   :  { %210 = vsyncpa [#allocation3 + $0x1], 1 }
  0x71   :  { %211 = vsyncpa [#allocation6], 1 }
  0x72   :  { %213 = vsyncpa [#allocation6 + $0x1], 1 }
  0x73   :  { %214 = vsyncpa [#allocation4], 1 }
  0x74   :  { %216 = vsyncpa [#allocation4 + $0x1], 1 }

// kernel: tpu_custom_call.1
= control target key start
LH: loop header
LB: loop body
LE: loop exit
PB: predicated region body
PF: predicated region fallthrough
CT: control target
= control target key end

     0   :  { %s2371_s0 = inlined_call_operand.hbm [shape: f32[2,32,128], index: 0, kind: input, shape index: {}]   ;;  %s2372_s1 = inlined_call_operand.vmem [shape: f32[1,128], index: 1, kind: input, shape index: {}]   ;;  %s2373_s2 = inlined_call_operand.vmem [shape: f32[1,128], index: 2, kind: input, shape index: {}]   ;;  %s2374_s3 = inlined_call_operand.hbm [shape: bf16[128,128], index: 3, kind: input, shape index: {}]   ;;  %s2375_s4 = inlined_call_operand.hbm [shape: bf16[128,128], index: 4, kind: input, shape index: {}]   ;;  %s2376_s5 = inlined_call_operand.hbm [shape: bf16[2,4,32,32], index: 5, kind: output, shape index: {0}]   ;;  %s2377_s6 = inlined_call_operand.hbm [shape: bf16[2,4,32,32], index: 6, kind: output, shape index: {1}]  }
   0x1   :  { %2386 = sst [smem:[#allocation24_spill]] %s2374_s3 }
   0x2   :  { %2387 = sst [smem:[#allocation25_spill]] %s2375_s4 }
   0x3   :  { %2388 = sst [smem:[#allocation26_spill]] %s2376_s5 }
   0x4   :  { %2389 = sst [smem:[#allocation27_spill]] %s2377_s6 }
   0x5   :  { %12 = vsyncpa [#allocation3], 0 }
   0x6   :  { %14 = vsyncpa [#allocation3 + $0x1], 0 }
   0x7   :  { %15 = vsyncpa [#allocation6], 0 }
   0x8   :  { %16 = vsyncpa [#allocation4], 0 }
   0x9   :  { %18 = vsyncpa [#allocation4 + $0x1], 0 }
   0xa   :  { %19 = vsyncpa [#allocation10], 0 }
   0xb   :  { %21 = vsyncpa [#allocation10 + $0x1], 0  ;;  %s2008_s21 = smov 0   ;;  %s2010_s22 = smov 0  }
   0xc   :  { %s2012_s23 = smov 0   ;;  %s2014_s24 = smov 0  }
   0xd   :  { %s2016_s25 = smov 0   ;;  %s2018_s26 = smov 0  }
   0xe   :  { %s2020_s27 = smov 0   ;;  %s2022_s28 = smov 0  }
   0xf LB: > { %2390 = sst [smem:[#allocation19_spill]] %s1915_s21  ;;  %s1482_s29 = sadd.s32 4294967295, %s1943_s28   ;;  %s1943_s28 = sphi %s2022_s28, %s27_s28   ;;  %s1939_s27 = sphi %s2020_s27, %s2422_s27   ;;  %s1935_s26 = sphi %s2018_s26, %s2421_s26   ;;  %s1931_s25 = sphi %s2016_s25, %s2420_s25   ;;  %s1927_s24 = sphi %s2014_s24, %s2419_s24   ;;  %s1923_s23 = sphi %s2012_s23, %s2418_s23   ;;  %s1919_s22 = sphi %s2010_s22, %s2417_s22   ;;  %s1915_s21 = sphi %s2008_s21, %s2416_s21  }
  0x10   : > { %2391 = sst [smem:[#allocation20_spill]] %s1931_s25  ;;  %s1483_s30 = sadd.s32 4294967294, %s1943_s28  }
  0x11   : > { %p61_p0 = scmp.ne.s32.totalorder %s1919_s22, %s1915_s21  ;;  %p2052_p1 = scmp.eq.s32.totalorder %s1482_s29, 0 }
  0x12   : > { %p2056_p2 = scmp.eq.s32.totalorder %s1482_s29, 3  ;;  %p177_p3 = scmp.eq.s32.totalorder %s1483_s30, 3 }
  0x13   : > { %s2392_s7 = scalar_select %p2052_p1, 1, 0 }
  0x14   : > { %p2062_p4 = por %p2052_p1, %p61_p0  ;;  %p1484_p5 = scmp.ge.s32.totalorder %s1943_s28, 1 }
  0x15   : > { %p2067_p6 = por %p177_p3, %p61_p0  ;;  %p212_p7 = scmp.lt.s32.totalorder %s1943_s28, 5 }
  0x16   : > { %s2394_s9 = scalar_select %p2062_p4, 1, 0 }
  0x17   : > { %s2395_s10 = scalar_select %p2067_p6, 1, 0 }
  0x18   : > { %p2072_p8 = pnand %p1484_p5, %p212_p7  ;;  %s1945_s12 = smov [#allocation5]  }
  0x19   : > { %2396 = sst [smem:[#allocation21_spill]] %s2395_s10  ;;  %s230_s13 = sshll.u32 %s1945_s12, 4  ;;  %s231_s13 = int_to_ptr.vmem [resolvable:$true] %s230_s13 }
  0x1a   : > { %p1650_p9 = pneg %p2072_p8  ;;  %s1946_s15 = smov [#allocation7]  }
  0x1b   : > { %s243_s16 = sshll.u32 %s1946_s15, 4  ;;  %s1796_s17 = scalar_lea.vmem %s231_s13, 1024  ;;  %s244_s16 = int_to_ptr.vmem [resolvable:$true] %s243_s16 }
  0x1c   : > { %p2080_p10 = pnand %p1650_p9, %p2052_p1  ;;  %p1797_p12 = scmp.ne.s32.totalorder %s231_s13, %s1796_s17 }
  0x1d   : > { %p1804_p3 = scmp.lt.s32.totalorder %s231_s13, %s231_s13  ;;  %p1805_p5 = scmp.lt.s32.totalorder %s1796_s17, %s1796_s17 }
  0x1e   : > { %p1787_p11 = pneg %p2080_p10 }
  0x1f   : > { %p1806_p7 = por %p1805_p5, %p1804_p3 }
  0x20   : > { %p1799_p13 = pnand %p1797_p12, %p1787_p11 }
  0x22   : > { %p1800_p0 = pneg %p1799_p13 }
  0x24   : > { %p1807_p9 = pnand %p1806_p7, %p1800_p0 }
  0x26   : > { %1810 = shalt.err (!%p1807_p9)
}
  0x27   : > { %s1947_s18 = smov 64   ;;  %s1948_s19 = smov 4  }
  0x28   : > { %s2399_s3 = sld [smem:[#allocation24_spill]]  ;;  %s1822_s30 = scalar_lea.vmem %s244_s16, 1024 }
  0x29   : > { %p1823_p6 = scmp.ne.s32.totalorder %s244_s16, %s1822_s30  ;;  %p1830_p1 = scmp.lt.s32.totalorder %s244_s16, %s244_s16 }
  0x2a   : > { %p1831_p4 = scmp.lt.s32.totalorder %s1822_s30, %s1822_s30 }
  0x2b   : > { %p1825_p12 = pnand %p1823_p6, %p1787_p11 }
  0x2c   : > { %p1832_p3 = por %p1831_p4, %p1830_p1 }
  0x2d   : > { %p1826_p13 = pneg %p1825_p12 }
  0x2e   : > { %1653 = dma.hbm_to_vmem [thread:$0]  (!%p2080_p10), %s2399_s3, 1024, %s231_s13, [#allocation6], %s1947_s18, %s1947_s18, %s1948_s19  }
  0x2f   : > { %p1833_p0 = pnand %p1832_p3, %p1826_p13 }
  0x31   : > { %1836 = shalt.err (!%p1833_p0)
}
  0x32   : > { %s2400_s4 = sld [smem:[#allocation25_spill]]  ;;  %s36_s13 = sadd.s32 1, %s1935_s26 }
  0x33   : > { %s39_s17 = sadd.s32 1, %s1939_s27  ;;  %p37_p1 = scmp.ge.s32.totalorder %s36_s13, 2 }
  0x34   : > { %s48_s14 = sadd.s32 1, %s1923_s23  ;;  %p55_p4 = scmp.ne.s32.totalorder %s1923_s23, %s1919_s22 }
  0x35   : > { %p56_p6 = scmp.eq.s32.totalorder %s1943_s28, 0  ;;  %s2424_s13 = smov (%p37_p1, %s36_s13), 0 }
  0x36   : > { %2401 = sst [smem:[#allocation22_spill]] %s2424_s13  ;;  %s2426_s17 = smov (!%p37_p1, %s39_s17), %s1939_s27 }
  0x37   : > { %s44_s20 = ssub.s32 %s1935_s26, %s2424_s13  ;;  %p2113_p11 = por %p56_p6, %p55_p4 }
  0x38   : > { %1656 = dma.hbm_to_vmem [thread:$0]  (!%p2080_p10), %s2400_s4, 1024, %s244_s16, [#allocation6], %s1947_s18, %s1947_s18, %s1948_s19  }
  0x39   : > { %p41_p10 = scmp.ge.s32.totalorder %s2426_s17, 2  ;;  %p2119_p5 = por %p2056_p2, %p55_p4 }
  0x3a   : > { %p1670_p7 = scmp.lt.s32.totalorder %s1943_s28, 4  ;;  %s257_s18 = sand.u32 1, %s1923_s23  }
  0x3b   : > { %s2403_s16 = scalar_select %p2119_p5, 1, 0 }
  0x3c   : > { %s2428_s17 = smov (%p41_p10, %s2426_s17), 0  ;;  %s1488_s19 = sshll.u32 %s257_s18, 4 }
  0x3d   : > { %2404 = sst [smem:[#allocation23_spill]] %s2403_s16  ;;  %s43_s30 = ssub.s32 %s1939_s27, %s2428_s17 }
  0x3e   : > { %s45_s12 = sor.u32 %s44_s20, %s43_s30  ;;  %s1489_s15 = sshll.u32 %s1935_s26, 1 }
  0x3f   : > { %p46_p9 = scmp.eq.s32.totalorder %s45_s12, 0  ;;  %s1490_s3 = sshll.u32 %s1939_s27, 2 }
  0x40   : > { %s267_s4 = sadd.s32 %s1490_s3, %s1489_s15  ;;  %s261_s13 = scalar_lea.vmem [#allocation2], %s1488_s19 }
  0x41   : > { %s270_s8 = sshll.u32 %s261_s13, 4  ;;  %s1491_s21 = sshll.u32 %s267_s4, 7  ;;  %s271_s8 = int_to_ptr.vmem [resolvable:$true] %s270_s8 }
  0x42   : > { %s2132_s10 = scalar_select %p46_p9, %s1923_s23, %s48_s14  }
  0x43   : > { %s269_s16 = scalar_lea.hbm %s2371_s0, %s1491_s21  ;;  %p2141_p2 = pnand %p1670_p7, %p2113_p11 }
  0x44   : > { %s258_s20 = scalar_lea.sflag [#allocation3], %s257_s18  ;;  %s1850_s3 = scalar_lea.vmem %s271_s8, 256 }
  0x45   : > { %p1839_p12 = pneg %p2141_p2  ;;  %p1851_p13 = scmp.ne.s32.totalorder %s271_s8, %s1850_s3 }
  0x46   : > { %s1949_s4 = smov [#allocation2]  }
  0x47   : > { %p1853_p3 = pnand %p1851_p13, %p1839_p12  ;;  %s1855_s13 = sshll.u32 %s1949_s4, 4  ;;  %s1856_s13 = int_to_ptr.vmem [resolvable:$false] %s1855_s13 }
  0x48   : > { %s1857_s14 = scalar_lea.vmem %s1856_s13, 512  ;;  %p1858_p1 = scmp.lt.s32.totalorder %s271_s8, %s1856_s13 }
  0x49   : > { %p1854_p0 = pneg %p1853_p3  ;;  %p1859_p4 = scmp.lt.s32.totalorder %s1857_s14, %s1850_s3 }
  0x4b   : > { %p1860_p6 = por %p1859_p4, %p1858_p1 }
  0x4d   : > { %p1861_p10 = pnand %p1860_p6, %p1854_p0 }
  0x4f   : > { %1864 = shalt.err (!%p1861_p10)
}
  0x50   : > { %s1950_s5 = smov 128   ;;  %s1951_s6 = smov 8  }
  0x51   : > { %1660 = dma.hbm_to_vmem [thread:$0]  (!%p2141_p2), %s269_s16, 256, %s271_s8, %s258_s20, %s1950_s5, %s1950_s5, %s1951_s6  }
  0x52   : > { %282 = sbr.rel (%p2072_p8) target bundleno = 789 (0x315), region = 40  ;;  %s2152_s21 = sand.u32 (!%p2072_p8), 1, %s1919_s22  }
  0x53   : > { %s1493_s29 = sshll.u32 (!%p2072_p8), %s2152_s21, 4  ;;  %s285_s18 = scalar_lea.sflag (!%p2072_p8), [#allocation3], %s2152_s21 }
  0x54   : > { %s288_s19 = scalar_lea.vmem (!%p2072_p8), [#allocation2], %s1493_s29  ;;  %p2406_p11 = scmp.ne.s32.totalorder (!%p2072_p8), %s2394_s9, 0 }
  0x57   : > { %1898 = dma.done.wait (%p2406_p11), %s285_s18, 256  }
  0x58   : > { %1900 = vsyncadd (%p2406_p11), %s285_s18, 4294967040  ;;  %p2407_p7 = scmp.ne.s32.totalorder %s2392_s7, 0 }
  0x5a   : > { %1902 = dma.done.wait (%p2407_p7), [#allocation6], 2048  }
  0x5b   : > { %1904 = vsyncadd (%p2407_p7), [#allocation6], 4294965248  ;;  %v334_v0 = vld [vmem:[%s288_s19] sm:$0xff]  ;;  %v335_v1 = vld [vmem:[%s288_s19 + $0x8] sm:$0xff]  ;;  %v1952_v4 = vmov 0.0   ;;  %vm1953_vm0 = vmmov 0   ;;  %v613_v54 = vlaneseq }
  0x5c   : > { %338 = vadd.xlane.f32.xlu0 %v334_v0  ;;  %v1765_v2 = vld [vmem:[#allocation5 + $0x38] sm:$0xff]   ;;  %1584 = vmatprep.subr.bf16.mxu0 %v1952_v4  ;;  %v1767_v13 = vld [vmem:[#allocation5 + $0x30] sm:$0xff]   ;;  %v1769_v15 = vld [vmem:[#allocation5 + $0x28] sm:$0xff]   ;;  %s1954_s16 = smov 64   ;;  %s1955_s30 = smov 96   ;;  %vm912_vm1 = vcmask 257024  }
  0x5d   : > { %v1766_v3 = vld [vmem:[#allocation7 + $0x38] sm:$0xff]   ;;  %1604 = vmatprep.subr.bf16.mxu1 %v1952_v4  ;;  %1585 = vmatpush3.bf16.msra.mxu0 %v1765_v2  ;;  %v1768_v14 = vld [vmem:[#allocation7 + $0x30] sm:$0xff]   ;;  %v1770_v16 = vld [vmem:[#allocation7 + $0x28] sm:$0xff]   ;;  %s1956_s12 = smov 32   ;;  %v1957_v52 = vmov 1983009808  }
  0x5e   : > { %1605 = vmatpush3.bf16.msra.mxu1 %v1766_v3  ;;  %1586 = vmatprep.subr.bf16.mxu0 %v1952_v4  ;;  %v1771_v17 = vld [vmem:[#allocation5 + $0x20] sm:$0xff]   ;;  %v1773_v19 = vld [vmem:[#allocation5 + $0x18] sm:$0xff]   ;;  %v1775_v21 = vld [vmem:[#allocation5 + $0x10] sm:$0xff]   ;;  %v611_v53 = vunpack.c.l.s4 %v1957_v52  ;;  %v1958_v55 = vmov 1934713408   ;;  %v614_v58 = vshrl.u32 %v613_v54, 7 }
  0x5f   : > { %1606 = vmatprep.subr.bf16.mxu1 %v1952_v4  ;;  %v1772_v18 = vld [vmem:[#allocation7 + $0x20] sm:$0xff]   ;;  %1600 = vmatprep.mubr.msk.bf16.mxu0 %vm1953_vm0, %v1952_v4  ;;  %v1774_v20 = vld [vmem:[#allocation7 + $0x18] sm:$0xff]   ;;  %v1776_v22 = vld [vmem:[#allocation7 + $0x10] sm:$0xff]   ;;  %v643_v56 = vunpack.c.l.s4 %v1958_v55  ;;  %s1496_s15 = sshll.u32 %s2152_s21, 5  ;;  %s1254_s3 = scalar_lea.sflag [#allocation4], %s2152_s21 }
  0x60   : > { %340 = vadd.xlane.f32.xlu0 %v335_v1  ;;  %1620 = vmatprep.mubr.msk.bf16.mxu1 %vm1953_vm0, %v1952_v4  ;;  %v1777_v23 = vld [vmem:[#allocation5 + $0x8] sm:$0xff]   ;;  %v1779_v25 = vld [vmem:[#allocation5] sm:$0xff]   ;;  %v612_v57 = vunpack.c.0.s8 %v611_v53  ;;  %s2221_s8 = scalar_lea.vmem [#allocation8], %s1496_s15  ;;  %s2279_s20 = scalar_lea.vmem [#allocation9], %s1496_s15 }
  0x61   : > { %1587 = vmatpush3.bf16.msra.mxu0 %v1767_v13  ;;  %v1778_v24 = vld [vmem:[#allocation7 + $0x8] sm:$0xff]   ;;  %v1780_v26 = vld [vmem:[#allocation7] sm:$0xff]   ;;  %v644_v61 = vunpack.c.0.s8 %v643_v56  ;;  %s1259_s4 = scalar_lea.sflag [#allocation10], %s2152_s21 }
  0x62   : > { %1607 = vmatpush3.bf16.msra.mxu1 %v1768_v14  ;;  %1588 = vmatprep.subr.bf16.mxu0 %v1952_v4  ;;  %v1498_v35 = vld [vmem:[%s2372_s1] ss:$0 sm:$0xff]  ;;  %v2180_v62 = vsub.s32 %v612_v57, %v614_v58 }
  0x63   : > { %1608 = vmatprep.subr.bf16.mxu1 %v1952_v4  ;;  %v1499_v39 = vld [vmem:[%s2373_s2] ss:$0 sm:$0xff] }
  0x65   : > { %1589 = vmatpush3.bf16.msra.mxu0 %v1769_v15 }
  0x66   : > { %1609 = vmatpush3.bf16.msra.mxu1 %v1770_v16  ;;  %1590 = vmatprep.subr.bf16.mxu0 %v1952_v4 }
  0x67   : > { %1610 = vmatprep.subr.bf16.mxu1 %v1952_v4 }
  0x69   : > { %1591 = vmatpush3.bf16.msra.mxu0 %v1771_v17 }
  0x6a   : > { %1611 = vmatpush3.bf16.msra.mxu1 %v1772_v18  ;;  %1592 = vmatprep.subr.bf16.mxu0 %v1952_v4 }
  0x6b   : > { %1612 = vmatprep.subr.bf16.mxu1 %v1952_v4 }
  0x6d   : > { %1593 = vmatpush3.bf16.msra.mxu0 %v1773_v19 }
  0x6e   : > { %1613 = vmatpush3.bf16.msra.mxu1 %v1774_v20  ;;  %1594 = vmatprep.subr.bf16.mxu0 %v1952_v4 }
  0x6f   : > { %1614 = vmatprep.subr.bf16.mxu1 %v1952_v4 }
  0x71   : > { %1595 = vmatpush3.bf16.msra.mxu0 %v1775_v21 }
  0x72   : > { %1615 = vmatpush3.bf16.msra.mxu1 %v1776_v22  ;;  %1596 = vmatprep.subr.bf16.mxu0 %v1952_v4 }
  0x73   : > { %1616 = vmatprep.subr.bf16.mxu1 %v1952_v4 }
  0x75   : > { %1597 = vmatpush3.bf16.msra.mxu0 %v1777_v23 }
  0x76   : > { %1617 = vmatpush3.bf16.msra.mxu1 %v1778_v24  ;;  %1598 = vmatprep.subr.bf16.mxu0 %v1952_v4 }
  0x77   : > { %1618 = vmatprep.subr.bf16.mxu1 %v1952_v4 }
  0x79   : > { %1599 = vmatpush3.bf16.msra.mxu0 %v1779_v25 }
  0x7a   : > { %1619 = vmatpush3.bf16.msra.mxu1 %v1780_v26 }
  0xe5   : > { %v339_v5 = vpop.xlane.xlu0 %338 }
  0xe6   : > { %v343_v6 = vmul.f32 0.0078125, %v339_v5  ;;  %v2182_v5 = vsub.s32 %v644_v61, %v614_v58 }
  0xe8   : > { %v345_v7 = vsub.f32 %v334_v0, %v343_v6 }
  0xe9   : > { %v341_v8 = vpop.xlane.xlu0 %340 }
  0xea   : > { %v344_v9 = vmul.f32 0.0078125, %v341_v8  ;;  %v347_v10 = vmul.f32 %v345_v7, %v345_v7 }
  0xec   : > { %v346_v11 = vsub.f32 %v335_v1, %v344_v9  ;;  %349 = vadd.xlane.f32.xlu1 %v347_v10 }
  0xee   : > { %v348_v12 = vmul.f32 %v346_v11, %v346_v11 }
  0xf0   : > { %351 = vadd.xlane.f32.xlu1 %v348_v12 }
 0x175   : > { %v350_v27 = vpop.xlane.xlu1 %349 }
 0x176   : > { %v353_v28 = vmul.f32 0.0078125, %v350_v27 }
 0x178   : > { %v355_v29 = vadd.f32 1e-05, %v353_v28 }
 0x179   : > { %v352_v30 = vpop.xlane.xlu1 %351 }
 0x17a   : > { %1781 = vrsqrt.f32 %v355_v29  ;;  %v354_v31 = vmul.f32 0.0078125, %v352_v30 }
 0x17c   : > { %v356_v32 = vadd.f32 1e-05, %v354_v31 }
 0x17e   : > { %1783 = vrsqrt.f32 %v356_v32 }
 0x187   : > { %v1782_v33 = vpop.eup %1781 }
 0x188   : > { %v359_v34 = vmul.f32 %v1782_v33, %v345_v7 }
 0x18a   : > { %v367_v38 = vmul.f32 %v1498_v35, %v359_v34 }
 0x18b   : > { %v1784_v36 = vpop.eup %1783 }
 0x18c   : > { %v360_v37 = vmul.f32 %v1784_v36, %v346_v11  ;;  %v375_v41 = vadd.f32 %v1499_v39, %v367_v38 }
 0x18e   : > { %v368_v40 = vmul.f32 %v1498_v35, %v360_v37 }
 0x190   : > { %v376_v42 = vadd.f32 %v1499_v39, %v368_v40 }
 0x192   : > { %v377_v43 = vpack.c.bf16 %v376_v42, %v375_v41 }
 0x194   : > { %1601 = vmatmul.mubr.bf16.vlgmr.msra.gmra.mxu0 %v377_v43  ;;  %1621 = vmatmul.mubr.bf16.vlgmr.msra.gmra.mxu1 %v377_v43 }
 0x254   : > { %v476_v44 = vpop.f32.mrf.mxu0  ;;  %v2170_v45 = vpop.f32.mrf.mxu1 }
 0x255   : > { %596 = vrot.lane.b32.xlu1 %v476_v44, %s1954_s16  ;;  %590 = vrot.lane.b32.xlu0 %v476_v44, %s1955_s30 }
 0x256   : > { %v1602_v46 = vpop.f32.mrf.mxu0  ;;  %v1622_v47 = vpop.f32.mrf.mxu1 }
 0x258   : > { %v479_v48 = vpop.f32.mrf.mxu0  ;;  %v2172_v49 = vpop.f32.mrf.mxu1 }
 0x259   : > { %602 = vrot.lane.b32.xlu0 %v476_v44, %s1956_s12  ;;  %592 = vrot.lane.b32.xlu1 %v479_v48, %s1955_s30 }
 0x25a   : > { %v1603_v50 = vpop.f32.mrf.mxu0  ;;  %v1623_v51 = vpop.f32.mrf.mxu1 }
 0x25d   : > { %923 = vrot.lane.b32.xlu0 %v2170_v45, %s1955_s30  ;;  %598 = vrot.lane.b32.xlu1 %v479_v48, %s1954_s16 }
 0x261   : > { %929 = vrot.lane.b32.xlu0 %v2170_v45, %s1954_s16  ;;  %604 = vrot.lane.b32.xlu1 %v479_v48, %s1956_s12 }
 0x265   : > { %935 = vrot.lane.b32.xlu0 %v2170_v45, %s1956_s12  ;;  %925 = vrot.lane.b32.xlu1 %v2172_v49, %s1955_s30 }
 0x269   : > { %931 = vrot.lane.b32.xlu1 %v2172_v49, %s1954_s16 }
 0x26d   : > { %937 = vrot.lane.b32.xlu1 %v2172_v49, %s1956_s12 }
 0x2c7   : > { %v597_v59 = vpop.permute.xlu1 %596  ;;  %v591_v60 = vpop.permute.xlu0 %590 }
 0x2c8   : > { %v608_v63 = vcombine.low %v476_v44, %v597_v59  ;;  %v609_v0 = vcombine.high %v476_v44, %v597_v59 }
 0x2ca   : > { %v616_v6 = vrot.slane %v608_v63, %v2180_v62  ;;  %v623_v7 = vrot.slane %v609_v0, %v2180_v62 }
 0x2cb   : > { %v603_v1 = vpop.permute.xlu0 %602  ;;  %v593_v2 = vpop.permute.xlu1 %592 }
 0x2cc   : > { %v624_v3 = vcombine.low %v591_v60, %v603_v1  ;;  %v625_v4 = vcombine.high %v591_v60, %v603_v1 }
 0x2ce   : > { %v632_v8 = vrot.slane %v624_v3, %v2180_v62  ;;  %v639_v9 = vrot.slane %v625_v4, %v2180_v62 }
 0x2cf   : > { %v2188_v10 = vpop.permute.xlu0 %923  ;;  %v599_v11 = vpop.permute.xlu1 %598 }
 0x2d0   : > { %v640_v12 = vcombine.low %v616_v6, %v632_v8  ;;  %v641_v13 = vcombine.high %v616_v6, %v632_v8  ;;  %v656_v14 = vcombine.low %v623_v7, %v639_v9  ;;  %v657_v15 = vcombine.high %v623_v7, %v639_v9 }
 0x2d1   : > { %v676_v16 = vcombine.low %v479_v48, %v599_v11  ;;  %v677_v17 = vcombine.high %v479_v48, %v599_v11 }
 0x2d2   : > { %v648_v18 = vrot.slane %v640_v12, %v2182_v5  ;;  %v655_v19 = vrot.slane %v641_v13, %v2182_v5  ;;  %v664_v20 = vrot.slane %v656_v14, %v2182_v5  ;;  %v671_v21 = vrot.slane %v657_v15, %v2182_v5 }
 0x2d3   : > { %v605_v22 = vpop.permute.xlu1 %604  ;;  %v930_v27 = vpop.permute.xlu0 %929  ;;  %v684_v28 = vrot.slane %v676_v16, %v2180_v62  ;;  %v691_v29 = vrot.slane %v677_v17, %v2180_v62 }
 0x2d4   : > { %v744_v23 = vcombine.low %v648_v18, %v655_v19  ;;  %v1516_v24 = vcombine.high %v648_v18, %v655_v19  ;;  %v760_v25 = vcombine.low %v664_v20, %v671_v21  ;;  %v1517_v26 = vcombine.high %v664_v20, %v671_v21 }
 0x2d5   : > { %v692_v30 = vcombine.low %v593_v2, %v605_v22  ;;  %v693_v31 = vcombine.high %v593_v2, %v605_v22  ;;  %v941_v36 = vcombine.low %v2170_v45, %v930_v27  ;;  %v942_v37 = vcombine.high %v2170_v45, %v930_v27 }
 0x2d6   : > { %v751_v32 = vrot.slane %v744_v23, %v2180_v62  ;;  %v759_v33 = vrot.slane %v1516_v24, %v2180_v62  ;;  %v767_v34 = vrot.slane %v760_v25, %v2180_v62  ;;  %v775_v35 = vrot.slane %v1517_v26, %v2180_v62 }
 0x2d7   : > { %v700_v38 = vrot.slane %v692_v30, %v2180_v62  ;;  %v707_v39 = vrot.slane %v693_v31, %v2180_v62  ;;  %v2204_v50 = vpop.permute.xlu1 %925  ;;  %v936_v3 = vpop.permute.xlu0 %935  ;;  %v949_v15 = vrot.slane %v941_v36, %v2180_v62  ;;  %v956_v16 = vrot.slane %v942_v37, %v2180_v62 }
 0x2d8   : > { %v776_v40 = vcombine.low %v751_v32, %v759_v33  ;;  %v777_v41 = vcombine.high %v751_v32, %v759_v33  ;;  %v792_v42 = vcombine.low %v767_v34, %v775_v35  ;;  %v793_v43 = vcombine.high %v767_v34, %v775_v35 }
 0x2d9   : > { %v708_v44 = vcombine.low %v684_v28, %v700_v38  ;;  %v709_v46 = vcombine.high %v684_v28, %v700_v38  ;;  %v724_v47 = vcombine.low %v691_v29, %v707_v39  ;;  %v725_v48 = vcombine.high %v691_v29, %v707_v39 }
 0x2da   : > { %v784_v51 = vrot.slane %v776_v40, %v2182_v5  ;;  %v791_v52 = vrot.slane %v777_v41, %v2182_v5  ;;  %v800_v45 = vrot.slane %v792_v42, %v2182_v5  ;;  %v807_v53 = vrot.slane %v793_v43, %v2182_v5 }
 0x2db   : > { %v716_v54 = vrot.slane %v708_v44, %v2182_v5  ;;  %v723_v55 = vrot.slane %v709_v46, %v2182_v5  ;;  %v732_v56 = vrot.slane %v724_v47, %v2182_v5  ;;  %v739_v57 = vrot.slane %v725_v48, %v2182_v5  ;;  %v932_v14 = vpop.permute.xlu1 %931 }
 0x2dc   : > { %v808_v58 = vcombine.low %v784_v51, %v800_v45  ;;  %v809_v59 = vcombine.high %v784_v51, %v800_v45  ;;  %v810_v60 = vcombine.low %v791_v52, %v807_v53  ;;  %v811_v61 = vcombine.high %v791_v52, %v807_v53 }
 0x2dd   : > { %v812_v63 = vcombine.low %v716_v54, %v723_v55  ;;  %v1518_v0 = vcombine.high %v716_v54, %v723_v55  ;;  %v828_v1 = vcombine.low %v732_v56, %v739_v57  ;;  %v1519_v2 = vcombine.high %v732_v56, %v739_v57 }
 0x2de   : > { %v1550_v4 = vpack.c.bf16 %v808_v58, %v808_v58  ;;  %v1552_v6 = vpack.c.bf16 %v809_v59, %v809_v59  ;;  %v1554_v7 = vpack.c.bf16 %v810_v60, %v810_v60  ;;  %v1556_v8 = vpack.c.bf16 %v811_v61, %v811_v61 }
 0x2df   : > { %v819_v9 = vrot.slane %v812_v63, %v2180_v62  ;;  %v827_v11 = vrot.slane %v1518_v0, %v2180_v62  ;;  %v835_v12 = vrot.slane %v828_v1, %v2180_v62  ;;  %v843_v13 = vrot.slane %v1519_v2, %v2180_v62  ;;  %v938_v41 = vpop.permute.xlu1 %937 }
 0x2e0   : > { %913 = vst.msk [vmem:[%s2221_s8] sm:$0xf] %vm912_vm1, %v1550_v4  ;;  %915 = vst.msk [vmem:[%s2221_s8 + $0x8] sm:$0xf] %vm912_vm1, %v1552_v6  ;;  %v957_v17 = vcombine.low %v2188_v10, %v936_v3  ;;  %v958_v18 = vcombine.high %v2188_v10, %v936_v3  ;;  %v1009_v25 = vcombine.low %v2172_v49, %v932_v14 }
 0x2e1   : > { %917 = vst.msk [vmem:[%s2221_s8 + $0x10] sm:$0xf] %vm912_vm1, %v1554_v7  ;;  %919 = vst.msk [vmem:[%s2221_s8 + $0x18] sm:$0xf] %vm912_vm1, %v1556_v8  ;;  %v844_v19 = vcombine.low %v819_v9, %v827_v11  ;;  %v845_v20 = vcombine.high %v819_v9, %v827_v11  ;;  %v860_v21 = vcombine.low %v835_v12, %v843_v13 }
 0x2e2   : > { %v861_v22 = vcombine.high %v835_v12, %v843_v13  ;;  %v965_v23 = vrot.slane %v957_v17, %v2180_v62  ;;  %v972_v24 = vrot.slane %v958_v18, %v2180_v62  ;;  %v1010_v26 = vcombine.high %v2172_v49, %v932_v14 }
 0x2e3   : > { %v852_v27 = vrot.slane %v844_v19, %v2182_v5  ;;  %v859_v28 = vrot.slane %v845_v20, %v2182_v5  ;;  %v868_v29 = vrot.slane %v860_v21, %v2182_v5  ;;  %v1025_v45 = vcombine.low %v2204_v50, %v938_v41 }
 0x2e4   : > { %v875_v10 = vrot.slane %v861_v22, %v2182_v5  ;;  %v973_v30 = vcombine.low %v949_v15, %v965_v23  ;;  %v974_v31 = vcombine.high %v949_v15, %v965_v23  ;;  %v989_v32 = vcombine.low %v956_v16, %v972_v24 }
 0x2e5   : > { %v990_v33 = vcombine.high %v956_v16, %v972_v24  ;;  %v876_v34 = vcombine.low %v852_v27, %v868_v29  ;;  %v877_v35 = vcombine.high %v852_v27, %v868_v29  ;;  %v1026_v53 = vcombine.high %v2204_v50, %v938_v41 }
 0x2e6   : > { %v878_v36 = vcombine.low %v859_v28, %v875_v10  ;;  %v879_v37 = vcombine.high %v859_v28, %v875_v10  ;;  %v981_v49 = vrot.slane %v973_v30, %v2182_v5  ;;  %v988_v38 = vrot.slane %v974_v31, %v2182_v5 }
 0x2e7   : > { %v997_v39 = vrot.slane %v989_v32, %v2182_v5  ;;  %v1004_v40 = vrot.slane %v990_v33, %v2182_v5  ;;  %v1551_v42 = vpack.c.bf16 %v876_v34, %v876_v34  ;;  %v1553_v43 = vpack.c.bf16 %v877_v35, %v877_v35 }
 0x2e8   : > { %v1555_v44 = vpack.c.bf16 %v878_v36, %v878_v36  ;;  %v1557_v46 = vpack.c.bf16 %v879_v37, %v879_v37  ;;  %v1077_v47 = vcombine.low %v981_v49, %v988_v38  ;;  %v1528_v48 = vcombine.high %v981_v49, %v988_v38 }
 0x2e9   : > { %v1093_v51 = vcombine.low %v997_v39, %v1004_v40  ;;  %v1529_v52 = vcombine.high %v997_v39, %v1004_v40  ;;  %914 = vst.msk [vmem:[%s2221_s8 + $0x4] sm:$0xf] %vm912_vm1, %v1551_v42  ;;  %916 = vst.msk [vmem:[%s2221_s8 + $0xc] sm:$0xf] %vm912_vm1, %v1553_v43  ;;  %v1017_v58 = vrot.slane %v1009_v25, %v2180_v62 }
 0x2ea   : > { %918 = vst.msk [vmem:[%s2221_s8 + $0x14] sm:$0xf] %vm912_vm1, %v1555_v44  ;;  %920 = vst.msk [vmem:[%s2221_s8 + $0x1c] sm:$0xf] %vm912_vm1, %v1557_v46  ;;  %v1084_v54 = vrot.slane %v1077_v47, %v2180_v62  ;;  %v1092_v55 = vrot.slane %v1528_v48, %v2180_v62  ;;  %v1024_v59 = vrot.slane %v1010_v26, %v2180_v62 }
 0x2eb   : > { %v1100_v56 = vrot.slane %v1093_v51, %v2180_v62  ;;  %v1108_v57 = vrot.slane %v1529_v52, %v2180_v62  ;;  %v1033_v60 = vrot.slane %v1025_v45, %v2180_v62  ;;  %v1040_v61 = vrot.slane %v1026_v53, %v2180_v62 }
 0x2ec   : > { %v1109_v63 = vcombine.low %v1084_v54, %v1092_v55  ;;  %v1110_v0 = vcombine.high %v1084_v54, %v1092_v55 }
 0x2ed   : > { %v1125_v1 = vcombine.low %v1100_v56, %v1108_v57  ;;  %v1126_v50 = vcombine.high %v1100_v56, %v1108_v57  ;;  %v1041_v2 = vcombine.low %v1017_v58, %v1033_v60  ;;  %v1042_v3 = vcombine.high %v1017_v58, %v1033_v60 }
 0x2ee   : > { %v1057_v4 = vcombine.low %v1024_v59, %v1040_v61  ;;  %v1058_v6 = vcombine.high %v1024_v59, %v1040_v61  ;;  %v1117_v7 = vrot.slane %v1109_v63, %v2182_v5  ;;  %v1124_v8 = vrot.slane %v1110_v0, %v2182_v5 }
 0x2ef   : > { %v1133_v9 = vrot.slane %v1125_v1, %v2182_v5  ;;  %v1140_v11 = vrot.slane %v1126_v50, %v2182_v5  ;;  %v1049_v12 = vrot.slane %v1041_v2, %v2182_v5  ;;  %v1056_v13 = vrot.slane %v1042_v3, %v2182_v5 }
 0x2f0   : > { %v1065_v14 = vrot.slane %v1057_v4, %v2182_v5  ;;  %v1072_v15 = vrot.slane %v1058_v6, %v2182_v5 }
 0x2f1   : > { %v1141_v16 = vcombine.low %v1117_v7, %v1133_v9  ;;  %v1142_v17 = vcombine.high %v1117_v7, %v1133_v9  ;;  %v1143_v18 = vcombine.low %v1124_v8, %v1140_v11  ;;  %v1144_v19 = vcombine.high %v1124_v8, %v1140_v11 }
 0x2f2   : > { %v1145_v20 = vcombine.low %v1049_v12, %v1056_v13  ;;  %v1530_v21 = vcombine.high %v1049_v12, %v1056_v13  ;;  %v1161_v22 = vcombine.low %v1065_v14, %v1072_v15  ;;  %v1531_v23 = vcombine.high %v1065_v14, %v1072_v15 }
 0x2f3   : > { %v1558_v24 = vpack.c.bf16 %v1141_v16, %v1141_v16  ;;  %v1560_v25 = vpack.c.bf16 %v1142_v17, %v1142_v17  ;;  %v1562_v26 = vpack.c.bf16 %v1143_v18, %v1143_v18  ;;  %v1564_v27 = vpack.c.bf16 %v1144_v19, %v1144_v19 }
 0x2f4   : > { %v1152_v28 = vrot.slane %v1145_v20, %v2180_v62  ;;  %v1160_v29 = vrot.slane %v1530_v21, %v2180_v62  ;;  %v1168_v10 = vrot.slane %v1161_v22, %v2180_v62  ;;  %v1176_v30 = vrot.slane %v1531_v23, %v2180_v62 }
 0x2f5   : > { %1245 = vst.msk [vmem:[%s2279_s20] sm:$0xf] %vm912_vm1, %v1558_v24  ;;  %1247 = vst.msk [vmem:[%s2279_s20 + $0x8] sm:$0xf] %vm912_vm1, %v1560_v25 }
 0x2f6   : > { %1249 = vst.msk [vmem:[%s2279_s20 + $0x10] sm:$0xf] %vm912_vm1, %v1562_v26  ;;  %1251 = vst.msk [vmem:[%s2279_s20 + $0x18] sm:$0xf] %vm912_vm1, %v1564_v27  ;;  %v1177_v31 = vcombine.low %v1152_v28, %v1160_v29  ;;  %v1178_v32 = vcombine.high %v1152_v28, %v1160_v29  ;;  %v1193_v62 = vcombine.low %v1168_v10, %v1176_v30 }
 0x2f7   : > { %v1194_v33 = vcombine.high %v1168_v10, %v1176_v30 }
 0x2f8   : > { %v1185_v34 = vrot.slane %v1177_v31, %v2182_v5  ;;  %v1192_v35 = vrot.slane %v1178_v32, %v2182_v5  ;;  %v1201_v36 = vrot.slane %v1193_v62, %v2182_v5 }
 0x2f9   : > { %v1208_v37 = vrot.slane %v1194_v33, %v2182_v5 }
 0x2fa   : > { %v1209_v49 = vcombine.low %v1185_v34, %v1201_v36  ;;  %v1210_v38 = vcombine.high %v1185_v34, %v1201_v36 }
 0x2fb   : > { %v1211_v39 = vcombine.low %v1192_v35, %v1208_v37  ;;  %v1212_v40 = vcombine.high %v1192_v35, %v1208_v37 }
 0x2fc   : > { %v1559_v41 = vpack.c.bf16 %v1209_v49, %v1209_v49  ;;  %v1561_v42 = vpack.c.bf16 %v1210_v38, %v1210_v38 }
 0x2fd   : > { %v1563_v43 = vpack.c.bf16 %v1211_v39, %v1211_v39  ;;  %v1565_v44 = vpack.c.bf16 %v1212_v40, %v1212_v40 }
 0x2fe   : > { %1246 = vst.msk [vmem:[%s2279_s20 + $0x4] sm:$0xf] %vm912_vm1, %v1559_v41  ;;  %1248 = vst.msk [vmem:[%s2279_s20 + $0xc] sm:$0xf] %vm912_vm1, %v1561_v42 }
 0x2ff   : > { %1250 = vst.msk [vmem:[%s2279_s20 + $0x14] sm:$0xf] %vm912_vm1, %v1563_v43  ;;  %1252 = vst.msk [vmem:[%s2279_s20 + $0x1c] sm:$0xf] %vm912_vm1, %v1565_v44 }
 0x300   : > { %s2408_s13 = sld [smem:[#allocation20_spill]]  ;;  %s1542_s5 = sshll.u32 %s1927_s24, 1 }
 0x301   : > { %s1284_s18 = sshll.u32 %s2221_s8, 4  ;;  %s2410_s9 = sld [smem:[#allocation26_spill]]  ;;  %s1285_s18 = int_to_ptr.vmem [resolvable:$true] %s1284_s18 }
 0x302   : > { %s1959_s16 = smov 128   ;;  %s1960_s30 = smov 256  }
 0x303   : > { %1634 = sst [smem:[#allocation12]] (%p2119_p5), %s1959_s16  ;;  %s1961_s12 = smov 2  }
 0x304   : > { %1635 = sst [smem:[#allocation12 + $0x1]] (%p2119_p5), %s1960_s30  ;;  %s1962_s24 = smov 64  }
 0x305   : > { %1636 = sst [smem:[#allocation12 + $0x2]] (%p2119_p5), %s1961_s12  ;;  %s1963_s15 = smov 4  }
 0x306   : > { %s1543_s6 = sshll.u32 %s2408_s13, 4  ;;  %1637 = sst [smem:[#allocation12 + $0x3]] (%p2119_p5), %s1962_s24 }
 0x307   : > { %s1271_s29 = sadd.s32 %s1543_s6, %s1542_s5  ;;  %1638 = sst [smem:[#allocation12 + $0x4]] (%p2119_p5), %s1962_s24 }
 0x308   : > { %s1544_s19 = sshll.u32 %s1271_s29, 6  ;;  %1639 = sst [smem:[#allocation12 + $0x5]] (%p2119_p5), %s1963_s15 }
 0x309   : > { %s1273_s11 = scalar_lea.hbm %s2410_s9, %s1544_s19  ;;  %s1964_s8 = smov 131072  }
 0x30a   : > { %s1965_s13 = smov 0  }
 0x30b   : > { %1640 = dma.general (%p2119_p5), %s1285_s18, 512, %s1273_s11, %s1254_s3, %s1964_s8, [#allocation12], %s1965_s13, 0  }
 0x30c   : > { %s2411_s29 = sld [smem:[#allocation27_spill]]  ;;  %s1325_s7 = sshll.u32 %s2279_s20, 4  ;;  %s1326_s7 = int_to_ptr.vmem [resolvable:$true] %s1325_s7 }
 0x30d   : > { %s1966_s9 = smov 128   ;;  %s1967_s16 = smov 256  }
 0x30e   : > { %1641 = sst [smem:[#allocation14]] (%p2119_p5), %s1966_s9  ;;  %s1968_s3 = smov 2  }
 0x30f   : > { %1642 = sst [smem:[#allocation14 + $0x1]] (%p2119_p5), %s1967_s16  ;;  %s1969_s18 = smov 64  }
 0x310   : > { %1643 = sst [smem:[#allocation14 + $0x2]] (%p2119_p5), %s1968_s3  ;;  %s1970_s11 = smov 4  }
 0x311   : > { %1644 = sst [smem:[#allocation14 + $0x3]] (%p2119_p5), %s1969_s18  ;;  %s1972_s20 = smov 0  }
 0x312   : > { %s1314_s25 = scalar_lea.hbm %s2411_s29, %s1544_s19  ;;  %1645 = sst [smem:[#allocation14 + $0x4]] (%p2119_p5), %s1969_s18 }
 0x313   : > { %1646 = sst [smem:[#allocation14 + $0x5]] (%p2119_p5), %s1970_s11  ;;  %s1971_s19 = smov 131072  }
 0x314   : > { %1647 = dma.general (%p2119_p5), %s1326_s7, 512, %s1314_s25, %s1259_s4, %s1971_s19, [#allocation14], %s1972_s20, 0  }
 0x315 PF: > { %s2412_s30 = sld [smem:[#allocation19_spill]]  ;;  %p1673_p8 = scmp.ge.s32.totalorder %s1943_s28, 2 }
 0x316   : > { %s2413_s12 = sld [smem:[#allocation21_spill]] }
 0x31b   : > { %s1353_s24 = sand.u32 1, %s2412_s30  }
 0x31c   : > { %p2414_p9 = scmp.ne.s32.totalorder %s2413_s12, 0  ;;  %s1354_s15 = scalar_lea.sflag [#allocation4], %s1353_s24 }
 0x31e   : > { %p1662_p2 = pnand %p1673_p8, %p2414_p9 }
 0x320   : > { %p1663_p12 = pneg %p1662_p2 }
 0x322   : > { %1906 = dma.done.wait (%p1663_p12), %s1354_s15, 512  }
 0x323   : > { %1908 = vsyncadd (%p1663_p12), %s1354_s15, 4294966784  ;;  %s1363_s8 = scalar_lea.sflag [#allocation10], %s1353_s24 }
 0x324   : > { %1910 = dma.done.wait (%p1663_p12), %s1363_s8, 512  }
 0x325   : > { %1912 = vsyncadd (%p1663_p12), %s1363_s8, 4294966784  ;;  %s27_s28 = sadd.s32 1, %s1943_s28   ;;  %s2415_s4 = sld [smem:[#allocation22_spill]] }
 0x326   : > { %p24_p13 = scmp.ge.s32.totalorder %s27_s28, 6   ;;  %s2416_s21 = smov %s1919_s22 }
 0x327   : > { %s2417_s22 = smov %s1923_s23  ;;  %s2418_s23 = smov %s2132_s10 }
 0x328   : > { %s2419_s24 = smov %s1935_s26  ;;  %s2420_s25 = smov %s1939_s27 }
 0x329   : > { %s2422_s27 = smov %s2428_s17  ;;  %26 = sbr.rel (!%p24_p13) target bundleno = 15 (0xf), region = 120 }
 0x32b   : > { %s2421_s26 = smov %s2415_s4 }
 0x32e   :  { %1368 = vsyncpa [#allocation3], 1 }
 0x32f   :  { %1370 = vsyncpa [#allocation3 + $0x1], 1 }
 0x330   :  { %1371 = vsyncpa [#allocation6], 1 }
 0x331   :  { %1372 = vsyncpa [#allocation4], 1 }
 0x332   :  { %1374 = vsyncpa [#allocation4 + $0x1], 1 }
 0x333   :  { %1375 = vsyncpa [#allocation10], 1 }
 0x334   :  { %1377 = vsyncpa [#allocation10 + $0x1], 1 }

</bundles_post_ra>
